<compile_context>
chip_gen: v7x
topology: tpu7x:2x2x1
jax: 0.10.0
libtpu: 0.0.40
codegen_flags: <defaults>
</compile_context>

<pallas_src>
import functools

import jax
import jax.numpy as jnp
from jax.experimental import pallas as pl
from jax.experimental.pallas import tpu as pltpu


def _conv_out_len(length, kernel, stride, pad):
    return (length + 2 * pad - kernel) // stride + 1


def _tap_select(l_out, l_in, shift, stride, dtype=jnp.float32):
    """One-hot (l_out, l_in) matrix S with S[j, i] = 1 iff i == stride*j + shift.

    Rows whose source index falls outside [0, l_in) come out all-zero, which
    implements the Conv1d zero-padding for boundary taps."""
    rows = jax.lax.broadcasted_iota(jnp.int32, (l_out, l_in), 0)
    cols = jax.lax.broadcasted_iota(jnp.int32, (l_out, l_in), 1)
    return (cols == stride * rows + shift).astype(dtype)


def _fused_forward_kernel(x_ref, w1_ref, b1_ref, w2_ref, b2_ref,
                          w3_ref, b3_ref, wl_ref, bl_ref, o_ref, *,
                          lengths, pad, stride):
    f32 = jnp.float32
    l_in, l1, l2, l3 = lengths
    k1 = w1_ref.shape[0]
    k2 = w2_ref.shape[0]
    k3 = w3_ref.shape[0]

    def conv_relu(h, w_ref, b_ref, l_out, l_src, k, cin_is_one):
        acc = None
        for t in range(k):                      # static tap unroll (3-5 taps)
            sel = _tap_select(l_out, l_src, t - pad, stride)     # (l_out, l_src)
            if cin_is_one:
                # (l_src,1)*(1,C) broadcast -> (l_src,C); gather rows -> (l_out,C)
                contrib = jnp.dot(sel, h * w_ref[t],
                                  preferred_element_type=f32)
            else:
                ht = jnp.dot(sel, h, preferred_element_type=f32)  # (l_out, Cin)
                contrib = jnp.dot(ht, w_ref[t],
                                  preferred_element_type=f32)     # (l_out, Cout)
            acc = contrib if acc is None else acc + contrib
        return jnp.maximum(acc + b_ref[...], 0.0)

    x = x_ref[...].astype(f32)                                   # (l_in, 1)
    h1 = conv_relu(x, w1_ref, b1_ref, l1, l_in, k1, True)        # (l1, C)
    h2 = conv_relu(h1, w2_ref, b2_ref, l2, l1, k2, False)        # (l2, C)
    h3 = conv_relu(h2, w3_ref, b3_ref, l3, l2, k3, False)        # (l3, C)

    # Flatten (torch C-major order absorbed into wl layout) + Linear.
    out = bl_ref[...].astype(f32)                                # (1, O)
    for l in range(l3):                                          # l3 == 5 taps
        out = out + jnp.dot(h3[l:l + 1, :], wl_ref[l],
                            preferred_element_type=f32)          # (1,C)@(C,O)
    o_ref[...] = out.astype(o_ref.dtype)


def init_params(key, output_size, channels, linear_in):
    # PyTorch-layout parameters (Conv1d: (Cout, Cin, K); Linear: (O, In)).
    ks = jax.random.split(key, 8)
    s = 0.1
    return {
        "w1": jax.random.normal(ks[0], (channels, 1, 5), jnp.float32) * s,
        "b1": jax.random.normal(ks[1], (channels,), jnp.float32) * s,
        "w2": jax.random.normal(ks[2], (channels, channels, 3), jnp.float32) * s,
        "b2": jax.random.normal(ks[3], (channels,), jnp.float32) * s,
        "w3": jax.random.normal(ks[4], (channels, channels, 3), jnp.float32) * s,
        "b3": jax.random.normal(ks[5], (channels,), jnp.float32) * s,
        "wl": jax.random.normal(ks[6], (output_size, linear_in), jnp.float32) * s,
        "bl": jax.random.normal(ks[7], (output_size,), jnp.float32) * s,
    }


def prepare_params(params, in_len, *, stride=2, pad=1):
    """One-time re-layout: torch layouts -> kernel-friendly layouts."""
    c = params["w1"].shape[0]
    o = params["wl"].shape[0]
    k1 = params["w1"].shape[2]
    k2 = params["w2"].shape[2]
    k3 = params["w3"].shape[2]
    l1 = _conv_out_len(in_len, k1, stride, pad)
    l2 = _conv_out_len(l1, k2, stride, pad)
    l3 = _conv_out_len(l2, k3, stride, pad)
    assert params["wl"].shape[1] == c * l3, (params["wl"].shape, c, l3)
    return {
        # per-tap (Cin, Cout) slabs: w[t][ci, co] = w_torch[co, ci, t]
        "w1": jnp.transpose(params["w1"], (2, 1, 0)),                    # (K1, 1, C)
        "b1": params["b1"].reshape(1, c),
        "w2": jnp.transpose(params["w2"], (2, 1, 0)),                    # (K2, C, C)
        "b2": params["b2"].reshape(1, c),
        "w3": jnp.transpose(params["w3"], (2, 1, 0)),                    # (K3, C, C)
        "b3": params["b3"].reshape(1, c),
        # torch Flatten is C-major over (C, L3): wl[o, c*L3 + l] -> wl_k[l, c, o]
        "wl": jnp.transpose(params["wl"].reshape(o, c, l3), (2, 1, 0)),  # (L3, C, O)
        "bl": params["bl"].reshape(1, o),
    }


@jax.jit
def convbase_v2_forward(prepared, x):
    """x: (B, 1, L) float32 (PyTorch NCL).  Returns (B, output_size)."""
    b, cin, l_in = x.shape
    assert cin == 1
    stride, pad = 2, 1
    k1, _, c = prepared["w1"].shape
    k2 = prepared["w2"].shape[0]
    k3 = prepared["w3"].shape[0]
    l3_w, _, o = prepared["wl"].shape
    l1 = _conv_out_len(l_in, k1, stride, pad)
    l2 = _conv_out_len(l1, k2, stride, pad)
    l3 = _conv_out_len(l2, k3, stride, pad)
    assert l3 == l3_w

    x_cl = x.reshape(b, l_in, 1)       # Cin == 1: pure relabel, no data movement

    kernel = functools.partial(
        _fused_forward_kernel,
        lengths=(l_in, l1, l2, l3), pad=pad, stride=stride)

    out = pl.pallas_call(
        kernel,
        out_shape=jax.ShapeDtypeStruct((b, 1, o), jnp.float32),
        grid=(b,),
        in_specs=[
            pl.BlockSpec((None, l_in, 1), lambda i: (i, 0, 0)),   # x (one batch elem)
            pl.BlockSpec((k1, 1, c), lambda i: (0, 0, 0)),        # w1 (resident)
            pl.BlockSpec((1, c), lambda i: (0, 0)),               # b1
            pl.BlockSpec((k2, c, c), lambda i: (0, 0, 0)),        # w2
            pl.BlockSpec((1, c), lambda i: (0, 0)),               # b2
            pl.BlockSpec((k3, c, c), lambda i: (0, 0, 0)),        # w3
            pl.BlockSpec((1, c), lambda i: (0, 0)),               # b3
            pl.BlockSpec((l3, c, o), lambda i: (0, 0, 0)),        # wl (per-l slabs)
            pl.BlockSpec((1, o), lambda i: (0, 0)),               # bl
        ],
        out_specs=pl.BlockSpec((None, 1, o), lambda i: (i, 0, 0)),
        compiler_params=pltpu.CompilerParams(
            dimension_semantics=("parallel",)),
    )(x_cl, prepared["w1"], prepared["b1"], prepared["w2"], prepared["b2"],
      prepared["w3"], prepared["b3"], prepared["wl"], prepared["bl"])
    return out.reshape(b, o)


def reference_forward(params, x):
    # Pure-JAX reference (no Pallas) for the correctness check.
    def conv(h, w, b, stride, pad):
        y = jax.lax.conv_general_dilated(
            h, w, (stride,), [(pad, pad)],
            dimension_numbers=("NCH", "OIH", "NCH"))
        return jax.nn.relu(y + b[None, :, None])

    h1 = conv(x, params["w1"], params["b1"], 2, 1)
    h2 = conv(h1, params["w2"], params["b2"], 2, 1)
    h3 = conv(h2, params["w3"], params["b3"], 2, 1)
    flat = h3.reshape(h3.shape[0], -1)
    return flat @ params["wl"].T + params["bl"]


if __name__ == "__main__":
    # ConvBase_v2 defaults: channels=25, linear_in=125 => input length 36 gives
    # conv lengths 17 -> 9 -> 5 and 25*5 = 125 flattened features.
    batch, in_len = 2, 36
    output_size, channels, linear_in = 10, 25, 125

    key = jax.random.PRNGKey(0)
    pkey, xkey = jax.random.split(key)
    params = init_params(pkey, output_size, channels, linear_in)
    x = jax.random.normal(xkey, (batch, 1, in_len), jnp.float32)

    prepared = prepare_params(params, in_len)        # one-time weight re-layout
    out = jax.block_until_ready(convbase_v2_forward(prepared, x))
    assert out.shape == (batch, output_size), out.shape

    ref = jax.block_until_ready(reference_forward(params, x))
    assert jnp.allclose(out, ref, atol=1e-4, rtol=1e-4), (
        float(jnp.max(jnp.abs(out - ref))))

    print("KERNEL_OK")
</pallas_src>

<mosaic_0001>
module attributes {stable_mosaic.version = 11 : i64} {
  func.func @_fused_forward_kernel(%arg0: i32, %arg1: memref<1x36x1xf32, #tpu.memory_space<vmem>>, %arg2: memref<5x1x25xf32, #tpu.memory_space<vmem>>, %arg3: memref<1x25xf32, #tpu.memory_space<vmem>>, %arg4: memref<3x25x25xf32, #tpu.memory_space<vmem>>, %arg5: memref<1x25xf32, #tpu.memory_space<vmem>>, %arg6: memref<3x25x25xf32, #tpu.memory_space<vmem>>, %arg7: memref<1x25xf32, #tpu.memory_space<vmem>>, %arg8: memref<5x25x10xf32, #tpu.memory_space<vmem>>, %arg9: memref<1x10xf32, #tpu.memory_space<vmem>>, %arg10: memref<1x1x10xf32, #tpu.memory_space<vmem>>) attributes {dimension_semantics = [#tpu.dimension_semantics<parallel>], iteration_bounds = array<i64: 2>, scalar_prefetch = 0 : i64, scratch_operands = 0 : i64, tpu.core_type = #tpu.core_type<tc>, window_params = [{transform_indices = @transform_0, window_bounds = array<i64: 1, 36, 1>}, {pipeline_mode = #tpu.pipeline_mode<synchronous>, transform_indices = @transform_1, window_bounds = array<i64: 5, 1, 25>}, {pipeline_mode = #tpu.pipeline_mode<synchronous>, transform_indices = @transform_2, window_bounds = array<i64: 1, 25>}, {pipeline_mode = #tpu.pipeline_mode<synchronous>, transform_indices = @transform_3, window_bounds = array<i64: 3, 25, 25>}, {pipeline_mode = #tpu.pipeline_mode<synchronous>, transform_indices = @transform_4, window_bounds = array<i64: 1, 25>}, {pipeline_mode = #tpu.pipeline_mode<synchronous>, transform_indices = @transform_5, window_bounds = array<i64: 3, 25, 25>}, {pipeline_mode = #tpu.pipeline_mode<synchronous>, transform_indices = @transform_6, window_bounds = array<i64: 1, 25>}, {pipeline_mode = #tpu.pipeline_mode<synchronous>, transform_indices = @transform_7, window_bounds = array<i64: 5, 25, 10>}, {pipeline_mode = #tpu.pipeline_mode<synchronous>, transform_indices = @transform_8, window_bounds = array<i64: 1, 10>}, {transform_indices = @transform_9, window_bounds = array<i64: 1, 1, 10>}]} {
    %c0 = arith.constant 0 : index
    %c0_0 = arith.constant 0 : index
    %c0_1 = arith.constant 0 : index
    %0 = vector.load %arg1[%c0, %c0_0, %c0_1] : memref<1x36x1xf32, #tpu.memory_space<vmem>>, vector<1x36x1xf32>
    %1 = vector.shape_cast %0 : vector<1x36x1xf32> to vector<36x1xf32>
    %2 = tpu.iota {dimensions = array<i32: 0>} : vector<17x36xi32>
    %3 = tpu.iota {dimensions = array<i32: 1>} : vector<17x36xi32>
    %c2_i32 = arith.constant 2 : i32
    %4 = vector.broadcast %c2_i32 : i32 to vector<17x36xi32>
    %5 = arith.muli %4, %2 : vector<17x36xi32>
    %c-1_i32 = arith.constant -1 : i32
    %6 = vector.broadcast %c-1_i32 : i32 to vector<17x36xi32>
    %7 = arith.addi %5, %6 : vector<17x36xi32>
    %8 = arith.cmpi eq, %3, %7 : vector<17x36xi32>
    %9 = arith.extui %8 : vector<17x36xi1> to vector<17x36xi32>
    %10 = arith.sitofp %9 : vector<17x36xi32> to vector<17x36xf32>
    %c0_2 = arith.constant 0 : index
    %c0_3 = arith.constant 0 : index
    %c0_4 = arith.constant 0 : index
    %11 = vector.load %arg2[%c0_2, %c0_3, %c0_4] : memref<5x1x25xf32, #tpu.memory_space<vmem>>, vector<1x1x25xf32>
    %12 = vector.shape_cast %11 : vector<1x1x25xf32> to vector<1x25xf32>
    %13 = vector.broadcast %1 : vector<36x1xf32> to vector<36x25xf32>
    %14 = vector.broadcast %12 : vector<1x25xf32> to vector<36x25xf32>
    %15 = arith.mulf %13, %14 : vector<36x25xf32>
    %cst = arith.constant dense<0.000000e+00> : vector<17x25xf32>
    %16 = tpu.matmul %10, %15, %cst {dimension_numbers = #tpu.dot_dimension_numbers<[1], [0], [0], [1], [0, 0, 1, 1], [], []>} : vector<17x36xf32>, vector<36x25xf32>, vector<17x25xf32> -> vector<17x25xf32>
    %17 = tpu.iota {dimensions = array<i32: 0>} : vector<17x36xi32>
    %18 = tpu.iota {dimensions = array<i32: 1>} : vector<17x36xi32>
    %c2_i32_5 = arith.constant 2 : i32
    %19 = vector.broadcast %c2_i32_5 : i32 to vector<17x36xi32>
    %20 = arith.muli %19, %17 : vector<17x36xi32>
    %c0_i32 = arith.constant 0 : i32
    %21 = vector.broadcast %c0_i32 : i32 to vector<17x36xi32>
    %22 = arith.addi %20, %21 : vector<17x36xi32>
    %23 = arith.cmpi eq, %18, %22 : vector<17x36xi32>
    %24 = arith.extui %23 : vector<17x36xi1> to vector<17x36xi32>
    %25 = arith.sitofp %24 : vector<17x36xi32> to vector<17x36xf32>
    %c1 = arith.constant 1 : index
    %c0_6 = arith.constant 0 : index
    %c0_7 = arith.constant 0 : index
    %26 = vector.load %arg2[%c1, %c0_6, %c0_7] : memref<5x1x25xf32, #tpu.memory_space<vmem>>, vector<1x1x25xf32>
    %27 = vector.shape_cast %26 : vector<1x1x25xf32> to vector<1x25xf32>
    %28 = vector.broadcast %1 : vector<36x1xf32> to vector<36x25xf32>
    %29 = vector.broadcast %27 : vector<1x25xf32> to vector<36x25xf32>
    %30 = arith.mulf %28, %29 : vector<36x25xf32>
    %cst_8 = arith.constant dense<0.000000e+00> : vector<17x25xf32>
    %31 = tpu.matmul %25, %30, %cst_8 {dimension_numbers = #tpu.dot_dimension_numbers<[1], [0], [0], [1], [0, 0, 1, 1], [], []>} : vector<17x36xf32>, vector<36x25xf32>, vector<17x25xf32> -> vector<17x25xf32>
    %32 = arith.addf %16, %31 : vector<17x25xf32>
    %33 = tpu.iota {dimensions = array<i32: 0>} : vector<17x36xi32>
    %34 = tpu.iota {dimensions = array<i32: 1>} : vector<17x36xi32>
    %c2_i32_9 = arith.constant 2 : i32
    %35 = vector.broadcast %c2_i32_9 : i32 to vector<17x36xi32>
    %36 = arith.muli %35, %33 : vector<17x36xi32>
    %c1_i32 = arith.constant 1 : i32
    %37 = vector.broadcast %c1_i32 : i32 to vector<17x36xi32>
    %38 = arith.addi %36, %37 : vector<17x36xi32>
    %39 = arith.cmpi eq, %34, %38 : vector<17x36xi32>
    %40 = arith.extui %39 : vector<17x36xi1> to vector<17x36xi32>
    %41 = arith.sitofp %40 : vector<17x36xi32> to vector<17x36xf32>
    %c2 = arith.constant 2 : index
    %c0_10 = arith.constant 0 : index
    %c0_11 = arith.constant 0 : index
    %42 = vector.load %arg2[%c2, %c0_10, %c0_11] : memref<5x1x25xf32, #tpu.memory_space<vmem>>, vector<1x1x25xf32>
    %43 = vector.shape_cast %42 : vector<1x1x25xf32> to vector<1x25xf32>
    %44 = vector.broadcast %1 : vector<36x1xf32> to vector<36x25xf32>
    %45 = vector.broadcast %43 : vector<1x25xf32> to vector<36x25xf32>
    %46 = arith.mulf %44, %45 : vector<36x25xf32>
    %cst_12 = arith.constant dense<0.000000e+00> : vector<17x25xf32>
    %47 = tpu.matmul %41, %46, %cst_12 {dimension_numbers = #tpu.dot_dimension_numbers<[1], [0], [0], [1], [0, 0, 1, 1], [], []>} : vector<17x36xf32>, vector<36x25xf32>, vector<17x25xf32> -> vector<17x25xf32>
    %48 = arith.addf %32, %47 : vector<17x25xf32>
    %49 = tpu.iota {dimensions = array<i32: 0>} : vector<17x36xi32>
    %50 = tpu.iota {dimensions = array<i32: 1>} : vector<17x36xi32>
    %c2_i32_13 = arith.constant 2 : i32
    %51 = vector.broadcast %c2_i32_13 : i32 to vector<17x36xi32>
    %52 = arith.muli %51, %49 : vector<17x36xi32>
    %c2_i32_14 = arith.constant 2 : i32
    %53 = vector.broadcast %c2_i32_14 : i32 to vector<17x36xi32>
    %54 = arith.addi %52, %53 : vector<17x36xi32>
    %55 = arith.cmpi eq, %50, %54 : vector<17x36xi32>
    %56 = arith.extui %55 : vector<17x36xi1> to vector<17x36xi32>
    %57 = arith.sitofp %56 : vector<17x36xi32> to vector<17x36xf32>
    %c3 = arith.constant 3 : index
    %c0_15 = arith.constant 0 : index
    %c0_16 = arith.constant 0 : index
    %58 = vector.load %arg2[%c3, %c0_15, %c0_16] : memref<5x1x25xf32, #tpu.memory_space<vmem>>, vector<1x1x25xf32>
    %59 = vector.shape_cast %58 : vector<1x1x25xf32> to vector<1x25xf32>
    %60 = vector.broadcast %1 : vector<36x1xf32> to vector<36x25xf32>
    %61 = vector.broadcast %59 : vector<1x25xf32> to vector<36x25xf32>
    %62 = arith.mulf %60, %61 : vector<36x25xf32>
    %cst_17 = arith.constant dense<0.000000e+00> : vector<17x25xf32>
    %63 = tpu.matmul %57, %62, %cst_17 {dimension_numbers = #tpu.dot_dimension_numbers<[1], [0], [0], [1], [0, 0, 1, 1], [], []>} : vector<17x36xf32>, vector<36x25xf32>, vector<17x25xf32> -> vector<17x25xf32>
    %64 = arith.addf %48, %63 : vector<17x25xf32>
    %65 = tpu.iota {dimensions = array<i32: 0>} : vector<17x36xi32>
    %66 = tpu.iota {dimensions = array<i32: 1>} : vector<17x36xi32>
    %c2_i32_18 = arith.constant 2 : i32
    %67 = vector.broadcast %c2_i32_18 : i32 to vector<17x36xi32>
    %68 = arith.muli %67, %65 : vector<17x36xi32>
    %c3_i32 = arith.constant 3 : i32
    %69 = vector.broadcast %c3_i32 : i32 to vector<17x36xi32>
    %70 = arith.addi %68, %69 : vector<17x36xi32>
    %71 = arith.cmpi eq, %66, %70 : vector<17x36xi32>
    %72 = arith.extui %71 : vector<17x36xi1> to vector<17x36xi32>
    %73 = arith.sitofp %72 : vector<17x36xi32> to vector<17x36xf32>
    %c4 = arith.constant 4 : index
    %c0_19 = arith.constant 0 : index
    %c0_20 = arith.constant 0 : index
    %74 = vector.load %arg2[%c4, %c0_19, %c0_20] : memref<5x1x25xf32, #tpu.memory_space<vmem>>, vector<1x1x25xf32>
    %75 = vector.shape_cast %74 : vector<1x1x25xf32> to vector<1x25xf32>
    %76 = vector.broadcast %1 : vector<36x1xf32> to vector<36x25xf32>
    %77 = vector.broadcast %75 : vector<1x25xf32> to vector<36x25xf32>
    %78 = arith.mulf %76, %77 : vector<36x25xf32>
    %cst_21 = arith.constant dense<0.000000e+00> : vector<17x25xf32>
    %79 = tpu.matmul %73, %78, %cst_21 {dimension_numbers = #tpu.dot_dimension_numbers<[1], [0], [0], [1], [0, 0, 1, 1], [], []>} : vector<17x36xf32>, vector<36x25xf32>, vector<17x25xf32> -> vector<17x25xf32>
    %80 = arith.addf %64, %79 : vector<17x25xf32>
    %c0_22 = arith.constant 0 : index
    %c0_23 = arith.constant 0 : index
    %81 = vector.load %arg3[%c0_22, %c0_23] : memref<1x25xf32, #tpu.memory_space<vmem>>, vector<1x25xf32>
    %82 = vector.broadcast %81 : vector<1x25xf32> to vector<17x25xf32>
    %83 = arith.addf %80, %82 : vector<17x25xf32>
    %cst_24 = arith.constant 0.000000e+00 : f32
    %84 = vector.broadcast %cst_24 : f32 to vector<17x25xf32>
    %85 = arith.maximumf %83, %84 : vector<17x25xf32>
    %86 = tpu.iota {dimensions = array<i32: 0>} : vector<9x17xi32>
    %87 = tpu.iota {dimensions = array<i32: 1>} : vector<9x17xi32>
    %c2_i32_25 = arith.constant 2 : i32
    %88 = vector.broadcast %c2_i32_25 : i32 to vector<9x17xi32>
    %89 = arith.muli %88, %86 : vector<9x17xi32>
    %c-1_i32_26 = arith.constant -1 : i32
    %90 = vector.broadcast %c-1_i32_26 : i32 to vector<9x17xi32>
    %91 = arith.addi %89, %90 : vector<9x17xi32>
    %92 = arith.cmpi eq, %87, %91 : vector<9x17xi32>
    %93 = arith.extui %92 : vector<9x17xi1> to vector<9x17xi32>
    %94 = arith.sitofp %93 : vector<9x17xi32> to vector<9x17xf32>
    %cst_27 = arith.constant dense<0.000000e+00> : vector<9x25xf32>
    %95 = tpu.matmul %94, %85, %cst_27 {dimension_numbers = #tpu.dot_dimension_numbers<[1], [0], [0], [1], [0, 0, 1, 1], [], []>} : vector<9x17xf32>, vector<17x25xf32>, vector<9x25xf32> -> vector<9x25xf32>
    %c0_28 = arith.constant 0 : index
    %c0_29 = arith.constant 0 : index
    %c0_30 = arith.constant 0 : index
    %96 = vector.load %arg4[%c0_28, %c0_29, %c0_30] : memref<3x25x25xf32, #tpu.memory_space<vmem>>, vector<1x25x25xf32>
    %97 = vector.shape_cast %96 : vector<1x25x25xf32> to vector<25x25xf32>
    %cst_31 = arith.constant dense<0.000000e+00> : vector<9x25xf32>
    %98 = tpu.matmul %95, %97, %cst_31 {dimension_numbers = #tpu.dot_dimension_numbers<[1], [0], [0], [1], [0, 0, 1, 1], [], []>} : vector<9x25xf32>, vector<25x25xf32>, vector<9x25xf32> -> vector<9x25xf32>
    %99 = tpu.iota {dimensions = array<i32: 0>} : vector<9x17xi32>
    %100 = tpu.iota {dimensions = array<i32: 1>} : vector<9x17xi32>
    %c2_i32_32 = arith.constant 2 : i32
    %101 = vector.broadcast %c2_i32_32 : i32 to vector<9x17xi32>
    %102 = arith.muli %101, %99 : vector<9x17xi32>
    %c0_i32_33 = arith.constant 0 : i32
    %103 = vector.broadcast %c0_i32_33 : i32 to vector<9x17xi32>
    %104 = arith.addi %102, %103 : vector<9x17xi32>
    %105 = arith.cmpi eq, %100, %104 : vector<9x17xi32>
    %106 = arith.extui %105 : vector<9x17xi1> to vector<9x17xi32>
    %107 = arith.sitofp %106 : vector<9x17xi32> to vector<9x17xf32>
    %cst_34 = arith.constant dense<0.000000e+00> : vector<9x25xf32>
    %108 = tpu.matmul %107, %85, %cst_34 {dimension_numbers = #tpu.dot_dimension_numbers<[1], [0], [0], [1], [0, 0, 1, 1], [], []>} : vector<9x17xf32>, vector<17x25xf32>, vector<9x25xf32> -> vector<9x25xf32>
    %c1_35 = arith.constant 1 : index
    %c0_36 = arith.constant 0 : index
    %c0_37 = arith.constant 0 : index
    %109 = vector.load %arg4[%c1_35, %c0_36, %c0_37] : memref<3x25x25xf32, #tpu.memory_space<vmem>>, vector<1x25x25xf32>
    %110 = vector.shape_cast %109 : vector<1x25x25xf32> to vector<25x25xf32>
    %cst_38 = arith.constant dense<0.000000e+00> : vector<9x25xf32>
    %111 = tpu.matmul %108, %110, %cst_38 {dimension_numbers = #tpu.dot_dimension_numbers<[1], [0], [0], [1], [0, 0, 1, 1], [], []>} : vector<9x25xf32>, vector<25x25xf32>, vector<9x25xf32> -> vector<9x25xf32>
    %112 = arith.addf %98, %111 : vector<9x25xf32>
    %113 = tpu.iota {dimensions = array<i32: 0>} : vector<9x17xi32>
    %114 = tpu.iota {dimensions = array<i32: 1>} : vector<9x17xi32>
    %c2_i32_39 = arith.constant 2 : i32
    %115 = vector.broadcast %c2_i32_39 : i32 to vector<9x17xi32>
    %116 = arith.muli %115, %113 : vector<9x17xi32>
    %c1_i32_40 = arith.constant 1 : i32
    %117 = vector.broadcast %c1_i32_40 : i32 to vector<9x17xi32>
    %118 = arith.addi %116, %117 : vector<9x17xi32>
    %119 = arith.cmpi eq, %114, %118 : vector<9x17xi32>
    %120 = arith.extui %119 : vector<9x17xi1> to vector<9x17xi32>
    %121 = arith.sitofp %120 : vector<9x17xi32> to vector<9x17xf32>
    %cst_41 = arith.constant dense<0.000000e+00> : vector<9x25xf32>
    %122 = tpu.matmul %121, %85, %cst_41 {dimension_numbers = #tpu.dot_dimension_numbers<[1], [0], [0], [1], [0, 0, 1, 1], [], []>} : vector<9x17xf32>, vector<17x25xf32>, vector<9x25xf32> -> vector<9x25xf32>
    %c2_42 = arith.constant 2 : index
    %c0_43 = arith.constant 0 : index
    %c0_44 = arith.constant 0 : index
    %123 = vector.load %arg4[%c2_42, %c0_43, %c0_44] : memref<3x25x25xf32, #tpu.memory_space<vmem>>, vector<1x25x25xf32>
    %124 = vector.shape_cast %123 : vector<1x25x25xf32> to vector<25x25xf32>
    %cst_45 = arith.constant dense<0.000000e+00> : vector<9x25xf32>
    %125 = tpu.matmul %122, %124, %cst_45 {dimension_numbers = #tpu.dot_dimension_numbers<[1], [0], [0], [1], [0, 0, 1, 1], [], []>} : vector<9x25xf32>, vector<25x25xf32>, vector<9x25xf32> -> vector<9x25xf32>
    %126 = arith.addf %112, %125 : vector<9x25xf32>
    %c0_46 = arith.constant 0 : index
    %c0_47 = arith.constant 0 : index
    %127 = vector.load %arg5[%c0_46, %c0_47] : memref<1x25xf32, #tpu.memory_space<vmem>>, vector<1x25xf32>
    %128 = vector.broadcast %127 : vector<1x25xf32> to vector<9x25xf32>
    %129 = arith.addf %126, %128 : vector<9x25xf32>
    %cst_48 = arith.constant 0.000000e+00 : f32
    %130 = vector.broadcast %cst_48 : f32 to vector<9x25xf32>
    %131 = arith.maximumf %129, %130 : vector<9x25xf32>
    %132 = tpu.iota {dimensions = array<i32: 0>} : vector<5x9xi32>
    %133 = tpu.iota {dimensions = array<i32: 1>} : vector<5x9xi32>
    %c2_i32_49 = arith.constant 2 : i32
    %134 = vector.broadcast %c2_i32_49 : i32 to vector<5x9xi32>
    %135 = arith.muli %134, %132 : vector<5x9xi32>
    %c-1_i32_50 = arith.constant -1 : i32
    %136 = vector.broadcast %c-1_i32_50 : i32 to vector<5x9xi32>
    %137 = arith.addi %135, %136 : vector<5x9xi32>
    %138 = arith.cmpi eq, %133, %137 : vector<5x9xi32>
    %139 = arith.extui %138 : vector<5x9xi1> to vector<5x9xi32>
    %140 = arith.sitofp %139 : vector<5x9xi32> to vector<5x9xf32>
    %cst_51 = arith.constant dense<0.000000e+00> : vector<5x25xf32>
    %141 = tpu.matmul %140, %131, %cst_51 {dimension_numbers = #tpu.dot_dimension_numbers<[1], [0], [0], [1], [0, 0, 1, 1], [], []>} : vector<5x9xf32>, vector<9x25xf32>, vector<5x25xf32> -> vector<5x25xf32>
    %c0_52 = arith.constant 0 : index
    %c0_53 = arith.constant 0 : index
    %c0_54 = arith.constant 0 : index
    %142 = vector.load %arg6[%c0_52, %c0_53, %c0_54] : memref<3x25x25xf32, #tpu.memory_space<vmem>>, vector<1x25x25xf32>
    %143 = vector.shape_cast %142 : vector<1x25x25xf32> to vector<25x25xf32>
    %cst_55 = arith.constant dense<0.000000e+00> : vector<5x25xf32>
    %144 = tpu.matmul %141, %143, %cst_55 {dimension_numbers = #tpu.dot_dimension_numbers<[1], [0], [0], [1], [0, 0, 1, 1], [], []>} : vector<5x25xf32>, vector<25x25xf32>, vector<5x25xf32> -> vector<5x25xf32>
    %145 = tpu.iota {dimensions = array<i32: 0>} : vector<5x9xi32>
    %146 = tpu.iota {dimensions = array<i32: 1>} : vector<5x9xi32>
    %c2_i32_56 = arith.constant 2 : i32
    %147 = vector.broadcast %c2_i32_56 : i32 to vector<5x9xi32>
    %148 = arith.muli %147, %145 : vector<5x9xi32>
    %c0_i32_57 = arith.constant 0 : i32
    %149 = vector.broadcast %c0_i32_57 : i32 to vector<5x9xi32>
    %150 = arith.addi %148, %149 : vector<5x9xi32>
    %151 = arith.cmpi eq, %146, %150 : vector<5x9xi32>
    %152 = arith.extui %151 : vector<5x9xi1> to vector<5x9xi32>
    %153 = arith.sitofp %152 : vector<5x9xi32> to vector<5x9xf32>
    %cst_58 = arith.constant dense<0.000000e+00> : vector<5x25xf32>
    %154 = tpu.matmul %153, %131, %cst_58 {dimension_numbers = #tpu.dot_dimension_numbers<[1], [0], [0], [1], [0, 0, 1, 1], [], []>} : vector<5x9xf32>, vector<9x25xf32>, vector<5x25xf32> -> vector<5x25xf32>
    %c1_59 = arith.constant 1 : index
    %c0_60 = arith.constant 0 : index
    %c0_61 = arith.constant 0 : index
    %155 = vector.load %arg6[%c1_59, %c0_60, %c0_61] : memref<3x25x25xf32, #tpu.memory_space<vmem>>, vector<1x25x25xf32>
    %156 = vector.shape_cast %155 : vector<1x25x25xf32> to vector<25x25xf32>
    %cst_62 = arith.constant dense<0.000000e+00> : vector<5x25xf32>
    %157 = tpu.matmul %154, %156, %cst_62 {dimension_numbers = #tpu.dot_dimension_numbers<[1], [0], [0], [1], [0, 0, 1, 1], [], []>} : vector<5x25xf32>, vector<25x25xf32>, vector<5x25xf32> -> vector<5x25xf32>
    %158 = arith.addf %144, %157 : vector<5x25xf32>
    %159 = tpu.iota {dimensions = array<i32: 0>} : vector<5x9xi32>
    %160 = tpu.iota {dimensions = array<i32: 1>} : vector<5x9xi32>
    %c2_i32_63 = arith.constant 2 : i32
    %161 = vector.broadcast %c2_i32_63 : i32 to vector<5x9xi32>
    %162 = arith.muli %161, %159 : vector<5x9xi32>
    %c1_i32_64 = arith.constant 1 : i32
    %163 = vector.broadcast %c1_i32_64 : i32 to vector<5x9xi32>
    %164 = arith.addi %162, %163 : vector<5x9xi32>
    %165 = arith.cmpi eq, %160, %164 : vector<5x9xi32>
    %166 = arith.extui %165 : vector<5x9xi1> to vector<5x9xi32>
    %167 = arith.sitofp %166 : vector<5x9xi32> to vector<5x9xf32>
    %cst_65 = arith.constant dense<0.000000e+00> : vector<5x25xf32>
    %168 = tpu.matmul %167, %131, %cst_65 {dimension_numbers = #tpu.dot_dimension_numbers<[1], [0], [0], [1], [0, 0, 1, 1], [], []>} : vector<5x9xf32>, vector<9x25xf32>, vector<5x25xf32> -> vector<5x25xf32>
    %c2_66 = arith.constant 2 : index
    %c0_67 = arith.constant 0 : index
    %c0_68 = arith.constant 0 : index
    %169 = vector.load %arg6[%c2_66, %c0_67, %c0_68] : memref<3x25x25xf32, #tpu.memory_space<vmem>>, vector<1x25x25xf32>
    %170 = vector.shape_cast %169 : vector<1x25x25xf32> to vector<25x25xf32>
    %cst_69 = arith.constant dense<0.000000e+00> : vector<5x25xf32>
    %171 = tpu.matmul %168, %170, %cst_69 {dimension_numbers = #tpu.dot_dimension_numbers<[1], [0], [0], [1], [0, 0, 1, 1], [], []>} : vector<5x25xf32>, vector<25x25xf32>, vector<5x25xf32> -> vector<5x25xf32>
    %172 = arith.addf %158, %171 : vector<5x25xf32>
    %c0_70 = arith.constant 0 : index
    %c0_71 = arith.constant 0 : index
    %173 = vector.load %arg7[%c0_70, %c0_71] : memref<1x25xf32, #tpu.memory_space<vmem>>, vector<1x25xf32>
    %174 = vector.broadcast %173 : vector<1x25xf32> to vector<5x25xf32>
    %175 = arith.addf %172, %174 : vector<5x25xf32>
    %cst_72 = arith.constant 0.000000e+00 : f32
    %176 = vector.broadcast %cst_72 : f32 to vector<5x25xf32>
    %177 = arith.maximumf %175, %176 : vector<5x25xf32>
    %c0_73 = arith.constant 0 : index
    %c0_74 = arith.constant 0 : index
    %178 = vector.load %arg9[%c0_73, %c0_74] : memref<1x10xf32, #tpu.memory_space<vmem>>, vector<1x10xf32>
    %179 = vector.extract_strided_slice %177 {offsets = [0, 0], sizes = [1, 25], strides = [1, 1]} : vector<5x25xf32> to vector<1x25xf32>
    %c0_75 = arith.constant 0 : index
    %c0_76 = arith.constant 0 : index
    %c0_77 = arith.constant 0 : index
    %180 = vector.load %arg8[%c0_75, %c0_76, %c0_77] : memref<5x25x10xf32, #tpu.memory_space<vmem>>, vector<1x25x10xf32>
    %181 = vector.shape_cast %180 : vector<1x25x10xf32> to vector<25x10xf32>
    %cst_78 = arith.constant dense<0.000000e+00> : vector<1x10xf32>
    %182 = tpu.matmul %179, %181, %cst_78 {dimension_numbers = #tpu.dot_dimension_numbers<[1], [0], [0], [1], [0, 0, 1, 1], [], []>} : vector<1x25xf32>, vector<25x10xf32>, vector<1x10xf32> -> vector<1x10xf32>
    %183 = arith.addf %178, %182 : vector<1x10xf32>
    %184 = vector.extract_strided_slice %177 {offsets = [1, 0], sizes = [1, 25], strides = [1, 1]} : vector<5x25xf32> to vector<1x25xf32>
    %c1_79 = arith.constant 1 : index
    %c0_80 = arith.constant 0 : index
    %c0_81 = arith.constant 0 : index
    %185 = vector.load %arg8[%c1_79, %c0_80, %c0_81] : memref<5x25x10xf32, #tpu.memory_space<vmem>>, vector<1x25x10xf32>
    %186 = vector.shape_cast %185 : vector<1x25x10xf32> to vector<25x10xf32>
    %cst_82 = arith.constant dense<0.000000e+00> : vector<1x10xf32>
    %187 = tpu.matmul %184, %186, %cst_82 {dimension_numbers = #tpu.dot_dimension_numbers<[1], [0], [0], [1], [0, 0, 1, 1], [], []>} : vector<1x25xf32>, vector<25x10xf32>, vector<1x10xf32> -> vector<1x10xf32>
    %188 = arith.addf %183, %187 : vector<1x10xf32>
    %189 = vector.extract_strided_slice %177 {offsets = [2, 0], sizes = [1, 25], strides = [1, 1]} : vector<5x25xf32> to vector<1x25xf32>
    %c2_83 = arith.constant 2 : index
    %c0_84 = arith.constant 0 : index
    %c0_85 = arith.constant 0 : index
    %190 = vector.load %arg8[%c2_83, %c0_84, %c0_85] : memref<5x25x10xf32, #tpu.memory_space<vmem>>, vector<1x25x10xf32>
    %191 = vector.shape_cast %190 : vector<1x25x10xf32> to vector<25x10xf32>
    %cst_86 = arith.constant dense<0.000000e+00> : vector<1x10xf32>
    %192 = tpu.matmul %189, %191, %cst_86 {dimension_numbers = #tpu.dot_dimension_numbers<[1], [0], [0], [1], [0, 0, 1, 1], [], []>} : vector<1x25xf32>, vector<25x10xf32>, vector<1x10xf32> -> vector<1x10xf32>
    %193 = arith.addf %188, %192 : vector<1x10xf32>
    %194 = vector.extract_strided_slice %177 {offsets = [3, 0], sizes = [1, 25], strides = [1, 1]} : vector<5x25xf32> to vector<1x25xf32>
    %c3_87 = arith.constant 3 : index
    %c0_88 = arith.constant 0 : index
    %c0_89 = arith.constant 0 : index
    %195 = vector.load %arg8[%c3_87, %c0_88, %c0_89] : memref<5x25x10xf32, #tpu.memory_space<vmem>>, vector<1x25x10xf32>
    %196 = vector.shape_cast %195 : vector<1x25x10xf32> to vector<25x10xf32>
    %cst_90 = arith.constant dense<0.000000e+00> : vector<1x10xf32>
    %197 = tpu.matmul %194, %196, %cst_90 {dimension_numbers = #tpu.dot_dimension_numbers<[1], [0], [0], [1], [0, 0, 1, 1], [], []>} : vector<1x25xf32>, vector<25x10xf32>, vector<1x10xf32> -> vector<1x10xf32>
    %198 = arith.addf %193, %197 : vector<1x10xf32>
    %199 = vector.extract_strided_slice %177 {offsets = [4, 0], sizes = [1, 25], strides = [1, 1]} : vector<5x25xf32> to vector<1x25xf32>
    %c4_91 = arith.constant 4 : index
    %c0_92 = arith.constant 0 : index
    %c0_93 = arith.constant 0 : index
    %200 = vector.load %arg8[%c4_91, %c0_92, %c0_93] : memref<5x25x10xf32, #tpu.memory_space<vmem>>, vector<1x25x10xf32>
    %201 = vector.shape_cast %200 : vector<1x25x10xf32> to vector<25x10xf32>
    %cst_94 = arith.constant dense<0.000000e+00> : vector<1x10xf32>
    %202 = tpu.matmul %199, %201, %cst_94 {dimension_numbers = #tpu.dot_dimension_numbers<[1], [0], [0], [1], [0, 0, 1, 1], [], []>} : vector<1x25xf32>, vector<25x10xf32>, vector<1x10xf32> -> vector<1x10xf32>
    %203 = arith.addf %198, %202 : vector<1x10xf32>
    %c0_95 = arith.constant 0 : index
    %c0_96 = arith.constant 0 : index
    %c0_97 = arith.constant 0 : index
    %204 = vector.load %arg10[%c0_95, %c0_96, %c0_97] : memref<1x1x10xf32, #tpu.memory_space<vmem>>, vector<1x1x10xf32>
    %205 = vector.shape_cast %204 : vector<1x1x10xf32> to vector<1x10xf32>
    %206 = vector.shape_cast %203 : vector<1x10xf32> to vector<1x1x10xf32>
    tpu.vector_store %arg10[%c0_95, %c0_96, %c0_97], %206 {strides = array<i32>} : memref<1x1x10xf32, #tpu.memory_space<vmem>>, vector<1x1x10xf32>,
    return
  }
  func.func @transform_0(%arg0: i32) -> (i32, i32, i32) {
    %c0_i32 = arith.constant 0 : i32
    %c0_i32_0 = arith.constant 0 : i32
    %c0_i32_1 = arith.constant 0 : i32
    return %arg0, %c0_i32, %c0_i32_0 : i32, i32, i32
  }
  func.func @transform_1(%arg0: i32) -> (i32, i32, i32) {
    %c0_i32 = arith.constant 0 : i32
    %c0_i32_0 = arith.constant 0 : i32
    %c0_i32_1 = arith.constant 0 : i32
    %c0_i32_2 = arith.constant 0 : i32
    return %c0_i32, %c0_i32_0, %c0_i32_1 : i32, i32, i32
  }
  func.func @transform_2(%arg0: i32) -> (i32, i32) {
    %c0_i32 = arith.constant 0 : i32
    %c0_i32_0 = arith.constant 0 : i32
    %c0_i32_1 = arith.constant 0 : i32
    return %c0_i32, %c0_i32_0 : i32, i32
  }
  func.func @transform_3(%arg0: i32) -> (i32, i32, i32) {
    %c0_i32 = arith.constant 0 : i32
    %c0_i32_0 = arith.constant 0 : i32
    %c0_i32_1 = arith.constant 0 : i32
    %c0_i32_2 = arith.constant 0 : i32
    return %c0_i32, %c0_i32_0, %c0_i32_1 : i32, i32, i32
  }
  func.func @transform_4(%arg0: i32) -> (i32, i32) {
    %c0_i32 = arith.constant 0 : i32
    %c0_i32_0 = arith.constant 0 : i32
    %c0_i32_1 = arith.constant 0 : i32
    return %c0_i32, %c0_i32_0 : i32, i32
  }
  func.func @transform_5(%arg0: i32) -> (i32, i32, i32) {
    %c0_i32 = arith.constant 0 : i32
    %c0_i32_0 = arith.constant 0 : i32
    %c0_i32_1 = arith.constant 0 : i32
    %c0_i32_2 = arith.constant 0 : i32
    return %c0_i32, %c0_i32_0, %c0_i32_1 : i32, i32, i32
  }
  func.func @transform_6(%arg0: i32) -> (i32, i32) {
    %c0_i32 = arith.constant 0 : i32
    %c0_i32_0 = arith.constant 0 : i32
    %c0_i32_1 = arith.constant 0 : i32
    return %c0_i32, %c0_i32_0 : i32, i32
  }
  func.func @transform_7(%arg0: i32) -> (i32, i32, i32) {
    %c0_i32 = arith.constant 0 : i32
    %c0_i32_0 = arith.constant 0 : i32
    %c0_i32_1 = arith.constant 0 : i32
    %c0_i32_2 = arith.constant 0 : i32
    return %c0_i32, %c0_i32_0, %c0_i32_1 : i32, i32, i32
  }
  func.func @transform_8(%arg0: i32) -> (i32, i32) {
    %c0_i32 = arith.constant 0 : i32
    %c0_i32_0 = arith.constant 0 : i32
    %c0_i32_1 = arith.constant 0 : i32
    return %c0_i32, %c0_i32_0 : i32, i32
  }
  func.func @transform_9(%arg0: i32) -> (i32, i32, i32) {
    %c0_i32 = arith.constant 0 : i32
    %c0_i32_0 = arith.constant 0 : i32
    %c0_i32_1 = arith.constant 0 : i32
    return %arg0, %c0_i32, %c0_i32_0 : i32, i32, i32
  }
}

</mosaic_0001>

<bundles_post_ra>
// kernel: convbase_v2_forward.1
= control target key start
LH: loop header
LB: loop body
LE: loop exit
PB: predicated region body
PF: predicated region fallthrough
CT: control target
= control target key end

     0   :  { %14 = vsyncpa [#allocation3], 0  ;;  %s3852_s0 = inlined_call_operand.vmem [shape: f32[2,36,1], index: 0, kind: input, shape index: {}]   ;;  %s3853_s1 = inlined_call_operand.vmem [shape: f32[5,1,25], index: 1, kind: input, shape index: {}]   ;;  %s3854_s2 = inlined_call_operand.vmem [shape: f32[1,25], index: 2, kind: input, shape index: {}]   ;;  %s3855_s3 = inlined_call_operand.vmem [shape: f32[3,25,25], index: 3, kind: input, shape index: {}]   ;;  %s3856_s4 = inlined_call_operand.vmem [shape: f32[1,25], index: 4, kind: input, shape index: {}]   ;;  %s3857_s5 = inlined_call_operand.vmem [shape: f32[3,25,25], index: 5, kind: input, shape index: {}]   ;;  %s3858_s6 = inlined_call_operand.vmem [shape: f32[1,25], index: 6, kind: input, shape index: {}]   ;;  %s3859_s7 = inlined_call_operand.vmem [shape: f32[5,25,10], index: 7, kind: input, shape index: {}]   ;;  %s3860_s8 = inlined_call_operand.vmem [shape: f32[1,10], index: 8, kind: input, shape index: {}]   ;;  %s3861_s9 = inlined_call_operand.hbm [shape: f32[2,1,10], index: 9, kind: output, shape index: {}]  }
   0x1   :  { %16 = vsyncpa [#allocation3 + $0x1], 0  ;;  %s3287_s30 = smov 0   ;;  %s3289_s10 = smov 0  }
   0x2   :  { %s3291_s11 = smov 0   ;;  %s3293_s12 = smov 0  }
   0x3 LB: > { %s3308_s13 = sadd.s32 4294967295, %s3229_s12   ;;  %s2448_s14 = sadd.s32 4294967294, %s3229_s12   ;;  %s3229_s12 = sphi %s3293_s12, %s3869_s12   ;;  %s3225_s11 = sphi %s3291_s11, %s3868_s11   ;;  %s3221_s10 = sphi %s3289_s10, %s3867_s10   ;;  %s3217_s30 = sphi %s3287_s30, %s3866_s30  }
   0x4   : > { %s3312_s15 = sadd.s32 1, %s3229_s12   ;;  %s223_s16 = sadd.s32 1, %s3225_s11 }
   0x5   : > { %s220_s17 = ssub.s32 %s3229_s12, %s3312_s15  ;;  %p233_p0 = scmp.ne.s32.totalorder %s3225_s11, %s3221_s10 }
   0x6   : > { %p221_p1 = scmp.eq.s32.totalorder %s220_s17, 0  ;;  %p234_p2 = scmp.eq.s32.totalorder %s3308_s13, 1 }
   0x7   : > { %p239_p3 = scmp.ne.s32.totalorder %s3221_s10, %s3217_s30  ;;  %p240_p4 = scmp.eq.s32.totalorder %s2448_s14, 1 }
   0x8   : > { %s3323_s18 = scalar_select %p221_p1, %s3225_s11, %s223_s16  }
   0x9   : > { %p3325_p5 = por %p234_p2, %p233_p0  ;;  %p3329_p6 = por %p240_p4, %p239_p3 }
   0xa   : > { %p2451_p7 = scmp.ge.s32.totalorder %s3229_s12, 1  ;;  %p290_p8 = scmp.lt.s32.totalorder %s3229_s12, 3 }
   0xc   : > { %p291_p9 = pnand %p2451_p7, %p290_p8 }
   0xd   : > { %p325_p10 = scmp.lt.s32.totalorder (!%p291_p9), %s3308_s13, 1  ;;  %v3231_v0 = vmov (!%p291_p9), 0   ;;  %v3232_v6 = vmov (!%p291_p9), 0.0|0.0   ;;  %vm3233_vm0 = vmmov (!%p291_p9), 0   ;;  %v3234_v7 = vmov (!%p291_p9), 0.0  }
   0xe   : > { %294 = sbr.rel (%p291_p9) target bundleno = 1796 (0x704), region = 56  ;;  %3166 = vset.pattern.permute.xlu1 (!%p291_p9), %v3231_v0  ;;  %3165 = vset.pattern.permute.xlu0 (!%p291_p9), %v3231_v0  ;;  %v335_v10 = vlaneseq (!%p291_p9)  ;;  %v2461_v12 = vld [vmem:[%s3853_s1 + $0x1] ss:$0 sm:$0xff] (!%p291_p9)  ;;  %v2474_v13 = vld [vmem:[%s3853_s1 + $0x2] ss:$0 sm:$0xff] (!%p291_p9)  ;;  %vm425_vm2 = vcmask (!%p291_p9), 1043456  }
   0xf   : > { %2961 = vmatprep.subr.bf16.mxu1 (!%p291_p9), %v3232_v6  ;;  %2973 = vmatprep.subr.bf16.mxu0 (!%p291_p9), %v3232_v6  ;;  %v2456_v32 = vld [vmem:[%s3853_s1] ss:$0 sm:$0xff] (!%p291_p9)  ;;  %v2492_v37 = vld [vmem:[%s3853_s1 + $0x4] ss:$0 sm:$0xff] (!%p291_p9)  ;;  %vm415_vm3 = vcmask (!%p291_p9), 293888  }
  0x10   : > { %2707 = vmatprep.mubr.msk.f32.mxu1 (!%p291_p9), %vm3233_vm0, %v3234_v7  ;;  %2745 = vmatprep.mubr.msk.f32.mxu0 (!%p291_p9), %vm3233_vm0, %v3234_v7  ;;  %v336_v14 = vshrl.u32 (!%p291_p9), %v335_v10, 7  ;;  %v3366_v22 = vand.u32 (!%p291_p9), 127, %v335_v10  ;;  %v2483_v59 = vld [vmem:[%s3853_s1 + $0x3] ss:$0 sm:$0xff] (!%p291_p9) }
  0x12   : > { %v3368_v23 = vmul.u32 (!%p291_p9), 2, %v336_v14  ;;  %v337_v28 = vadd.s32 (!%p291_p9), 8, %v336_v14  ;;  %v338_v35 = vadd.s32 (!%p291_p9), 16, %v336_v14 }
  0x14   : > { %v601_v29 = vadd.s32 (!%p291_p9), 1, %v3368_v23  ;;  %vm393_vm1 = vcmp.eq.s32.totalorder (!%p291_p9), %v3366_v22, %v3368_v23  ;;  %v3382_v34 = vmul.u32 (!%p291_p9), 2, %v337_v28  ;;  %v3401_v44 = vmul.u32 (!%p291_p9), 2, %v338_v35 }
  0x15   : > { %s326_s21 = scalar_select %p325_p10, %s3308_s13, 1  ;;  %v3391_v38 = vsel %vm393_vm1, 1.0, %v3234_v7  ;;  %v344_v54 = vadd.s32 4294967295, %v3368_v23  ;;  %v841_v0 = vadd.s32 3, %v3368_v23 }
  0x16   : > { %vm604_vm4 = vcmp.eq.s32.totalorder %v3366_v22, %v601_v29  ;;  %vm394_vm5 = vcmp.eq.s32.totalorder %v3366_v22, %v3382_v34  ;;  %v602_v49 = vadd.s32 1, %v3382_v34  ;;  %vm395_vm6 = vcmp.eq.s32.totalorder %v3366_v22, %v3401_v44 }
  0x17   : > { %s3120_s22 = smul.u32 40, %s326_s21  ;;  %v3408_v48 = vsel %vm604_vm4, 1.0, %v3234_v7  ;;  %v3423_v53 = vsel %vm394_vm5, 1.0, %v3234_v7  ;;  %v603_v56 = vadd.s32 1, %v3401_v44  ;;  %v2459_v58 = vsel %vm395_vm6, 1.0, %v3234_v7 }
  0x18   : > { %vm605_vm7 = vcmp.eq.s32.totalorder %v3366_v22, %v602_v49  ;;  %vm347_vm8 = vcmp.eq.s32.totalorder %v3366_v22, %v344_v54  ;;  %v345_v60 = vadd.s32 4294967295, %v3382_v34  ;;  %vm844_vm11 = vcmp.eq.s32.totalorder %v3366_v22, %v841_v0 }
  0x19   : > { %s329_s25 = scalar_lea.vmem %s3852_s0, %s3120_s22  ;;  %v3456_v63 = vsel %vm605_vm7, 1.0, %v3234_v7  ;;  %vm606_vm9 = vcmp.eq.s32.totalorder %v3366_v22, %v603_v56  ;;  %vm974_vm5 = vcmask 138240   ;;  %vm1146_vm7 = vcmask 203776   ;;  %s323_s22 = sand.u32 1, %s3221_s10  }
  0x1a   : > { %v332_v1 = vld [vmem:[%s329_s25 + $0x10] sm:$0xff]  ;;  %v330_v2 = vld [vmem:[%s329_s25] sm:$0xff]  ;;  %v333_v3 = vld [vmem:[%s329_s25 + $0x18] sm:$0xff]  ;;  %vm348_vm10 = vcmp.eq.s32.totalorder %v3366_v22, %v345_v60  ;;  %s324_s26 = scalar_lea.vmem [#allocation2], %s323_s22  ;;  %s2381_s16 = scalar_lea.sflag [#allocation3], %s323_s22 }
  0x1b   : > { %369 = vperm.xlu1 %3166, %v332_v1   ;;  %359 = vperm.xlu0 %3165, %v330_v2   ;;  %v331_v4 = vld [vmem:[%s329_s25 + $0x8] sm:$0xff]  ;;  %v334_v5 = vld [vmem:[%s329_s25 + $0x20] sm:$0xf]  ;;  %s2572_s25 = sshll.u32 %s3308_s13, 4  ;;  %s2393_s27 = sshll.u32 %s324_s26, 4  ;;  %s3812_s27 = int_to_ptr.vmem [resolvable:$true] %s2393_s27 }
  0x1c   : > { %s3810_s14 = scalar_lea.hbm %s3861_s9, %s2572_s25  ;;  %s3167_s17 = scalar_lea.vmem %s3812_s27, 16 }
  0x1d   : > { %p3168_p11 = scmp.ne.s32.totalorder %s3812_s27, %s3167_s17  ;;  %s3236_s13 = smov [#allocation2]  }
  0x1e   : > { %s3171_s21 = sshll.u32 %s3236_s13, 4  ;;  %s3172_s21 = int_to_ptr.vmem [resolvable:$false] %s3171_s21 }
  0x1f   : > { %374 = vperm.xlu1 %3166, %v333_v3   ;;  %364 = vperm.xlu0 %3165, %v331_v4   ;;  %v3468_v3 = vsel %vm347_vm8, 1.0, %v3234_v7  ;;  %v346_v4 = vadd.s32 4294967295, %v3401_v44  ;;  %vm1496_vm8 = vcmask 72704   ;;  %p3169_p12 = pnand %p3168_p11, %p3325_p5  ;;  %s3173_s23 = scalar_lea.vmem %s3172_s21, 32 }
  0x20   : > { %p3174_p0 = scmp.lt.s32.totalorder %s3812_s27, %s3172_s21  ;;  %p3175_p1 = scmp.lt.s32.totalorder %s3173_s23, %s3167_s17 }
  0x21   : > { %vm349_vm12 = vcmp.eq.s32.totalorder %v3366_v22, %v346_v4  ;;  %p3170_p13 = pneg %p3169_p12 }
  0x22   : > { %p3176_p2 = por %p3175_p1, %p3174_p0 }
  0x23   : > { %379 = vperm.xlu0 %3165, %v334_v5  }
  0x24   : > { %p3177_p3 = pnand %p3176_p2, %p3170_p13 }
  0x9a   : > { %v3346_v8 = vpop.permute.xlu0 %359  ;;  %v3348_v9 = vpop.permute.xlu1 %369 }
  0x9b   : > { %v410_v18 = vmul.f32 %v2461_v12, %v3346_v8  ;;  %v621_v19 = vmul.f32 %v2474_v13, %v3346_v8  ;;  %v412_v20 = vmul.f32 %v2461_v12, %v3348_v9  ;;  %v623_v21 = vmul.f32 %v2474_v13, %v3348_v9 }
  0x9c   : > { %v388_v39 = vmul.f32 %v2456_v32, %v3346_v8  ;;  %v390_v43 = vmul.f32 %v2456_v32, %v3348_v9  ;;  %v861_v45 = vmul.f32 %v2492_v37, %v3346_v8  ;;  %v863_v50 = vmul.f32 %v2492_v37, %v3348_v9 }
  0x9d   : > { %v741_v1 = vmul.f32 %v2483_v59, %v3346_v8  ;;  %v743_v5 = vmul.f32 %v2483_v59, %v3348_v9  ;;  %v3490_v9 = vsel %vm348_vm10, 1.0, %v3234_v7 }
  0x9e   : > { %v3350_v11 = vpop.permute.xlu0 %364  ;;  %v3358_v15 = vpop.permute.xlu1 %374 }
  0x9f   : > { %v411_v16 = vmul.f32 %v2461_v12, %v3350_v11  ;;  %v622_v17 = vmul.f32 %v2474_v13, %v3350_v11  ;;  %v413_v24 = vmul.f32 %v2461_v12, %v3358_v15  ;;  %v624_v25 = vmul.f32 %v2474_v13, %v3358_v15 }
  0xa0   : > { %v389_v36 = vmul.f32 %v2456_v32, %v3350_v11  ;;  %v862_v40 = vmul.f32 %v2492_v37, %v3350_v11  ;;  %v391_v46 = vmul.f32 %v2456_v32, %v3358_v15  ;;  %v864_v51 = vmul.f32 %v2492_v37, %v3358_v15 }
  0xa1   : > { %v2962_v26 = vpack.c.bf16 %v411_v16, %v410_v18  ;;  %v2974_v27 = vpack.c.bf16 %v622_v17, %v621_v19  ;;  %v2965_v30 = vpack.c.bf16 %v413_v24, %v412_v20  ;;  %v2977_v31 = vpack.c.bf16 %v624_v25, %v623_v21 }
  0xa2   : > { %v3380_v33 = vpop.permute.xlu0 %379  ;;  %v2968_v47 = vpack.c.bf16 %v389_v36, %v388_v39  ;;  %v3417_v52 = vpack.c.bf16 %v862_v40, %v861_v45  ;;  %v2971_v55 = vpack.c.bf16 %v391_v46, %v390_v43  ;;  %v3439_v57 = vpack.c.bf16 %v864_v51, %v863_v50 }
  0xa3   : > { %2963 = vmatpush3.bf16.msra.mxu1 %v2962_v26  ;;  %2975 = vmatpush3.bf16.msra.mxu0 %v2974_v27  ;;  %v414_v41 = vmul.f32 %v2461_v12, %v3380_v33  ;;  %v625_v42 = vmul.f32 %v2474_v13, %v3380_v33  ;;  %v742_v61 = vmul.f32 %v2483_v59, %v3350_v11  ;;  %v2472_v11 = vsel %vm606_vm9, 1.0, %v3234_v7 }
  0xa4   : > { %2964 = vmatprep.subr.bf16.mxu1 %v3232_v6  ;;  %2976 = vmatprep.subr.bf16.mxu0 %v3232_v6  ;;  %v392_v62 = vmul.f32 %v2456_v32, %v3380_v33  ;;  %v865_v2 = vmul.f32 %v2492_v37, %v3380_v33  ;;  %v744_v8 = vmul.f32 %v2483_v59, %v3358_v15  ;;  %v842_v12 = vadd.s32 3, %v3382_v34 }
  0xa5   : > { %v2980_v10 = vpack.c.bf16 %v742_v61, %v741_v1  ;;  %v721_v13 = vadd.s32 2, %v3368_v23  ;;  %v2488_v15 = vsel %vm844_vm11, 1.0, %v3234_v7  ;;  %v2455_v16 = vsel %vm349_vm12, 1.0, %v3234_v7  ;;  %v2497_v61 = vld [vmem:[%s3854_s2] ss:$0 sm:$0xff] }
  0xa6   : > { %v2983_v14 = vpack.c.bf16 %v744_v8, %v743_v5  ;;  %vm845_vm13 = vcmp.eq.s32.totalorder %v3366_v22, %v842_v12  ;;  %v722_v17 = vadd.s32 2, %v3382_v34  ;;  %v745_v18 = vmul.f32 %v2483_v59, %v3380_v33 }
  0xa7   : > { %2966 = vmatpush3.bf16.msra.mxu1 %v2965_v30  ;;  %2978 = vmatpush3.bf16.msra.mxu0 %v2977_v31  ;;  %vm724_vm14 = vcmp.eq.s32.totalorder %v3366_v22, %v721_v13  ;;  %v2489_v19 = vsel %vm845_vm13, 1.0, %v3234_v7  ;;  %v723_v21 = vadd.s32 2, %v3401_v44  ;;  %v843_v24 = vadd.s32 3, %v3401_v44 }
  0xa8   : > { %2705 = vmatprep.subr.mxu1 %v3234_v7  ;;  %2743 = vmatprep.subr.mxu0 %v3234_v7  ;;  %v2479_v20 = vsel %vm724_vm14, 1.0, %v3234_v7  ;;  %vm725_vm15 = vcmp.eq.s32.totalorder %v3366_v22, %v722_v17  ;;  %vm2378_vm9 = vcmask 73728  }
  0xa9   : > { %v2480_v23 = vsel %vm725_vm15, 1.0, %v3234_v7  ;;  %vm726_vm1 = vcmp.eq.s32.totalorder %v3366_v22, %v723_v21  ;;  %vm846_vm4 = vcmp.eq.s32.totalorder %v3366_v22, %v843_v24  ;;  %v2506_v21 = vld [vmem:[%s3855_s3 + $0x30] sm:$0xff] }
  0xaa   : > { %v2481_v25 = vsel %vm726_vm1, 1.0, %v3234_v7  ;;  %v2490_v26 = vsel %vm846_vm4, 1.0, %v3234_v7 }
  0xab   : > { %2706 = vmatpush3.msk.msra.mxu1 %vm425_vm2, %v414_v41  ;;  %2744 = vmatpush3.msk.msra.mxu0 %vm425_vm2, %v625_v42 }
  0xac   : > { %2708 = vmatmul.mubr.msk.f32.vlgmr.msra.gmra.mrb[0].mxu1 %vm415_vm3, %v3391_v38  ;;  %2967 = vmatprep.subr.bf16.mxu1 %v3232_v6 }
  0xad   : > { %2985 = vmatprep.subr.bf16.mxu0 %v3232_v6  ;;  %2969 = vmatpush3.bf16.msra.mxu1 %v2968_v47 }
  0xae   : > { %2746 = vmatmul.mubr.msk.f32.vlgmr.msra.gmra.mrb[0].mxu0 %vm415_vm3, %v3408_v48  ;;  %2710 = vmatprep.mubr.msk.f32.mxu1 %vm3233_vm0, %v3234_v7 }
  0xaf   : > { %2987 = vmatpush3.bf16.msra.mxu0 %v3417_v52  ;;  %2970 = vmatprep.subr.bf16.mxu1 %v3232_v6 }
  0xb0   : > { %2711 = vmatmul.mubr.msk.f32.gmra.mrb[2].mxu1 %vm415_vm3, %v3423_v53  ;;  %2988 = vmatprep.subr.bf16.mxu0 %v3232_v6 }
  0xb1   : > { %2972 = vmatpush3.bf16.msra.mxu1 %v2971_v55  ;;  %2713 = vmatprep.mubr.msk.f32.mxu1 %vm3233_vm0, %v3234_v7 }
  0xb2   : > { %2724 = vmatprep.subr.mxu1 %v3234_v7  ;;  %2748 = vmatprep.mubr.msk.f32.mxu0 %vm3233_vm0, %v3234_v7 }
  0xb3   : > { %2990 = vmatpush3.bf16.msra.mxu0 %v3439_v57 }
  0xb4   : > { %2714 = vmatmul.mubr.msk.f32.gmra.mrb[4].mxu1 %vm415_vm3, %v2459_v58  ;;  %2781 = vmatprep.subr.mxu0 %v3234_v7 }
  0xb5   : > { %2725 = vmatpush3.msk.msra.mxu1 %vm425_vm2, %v392_v62  ;;  %2726 = vmatprep.mubr.msk.f32.mxu1 %vm3233_vm0, %v3234_v7 }
  0xb6   : > { %2979 = vmatprep.subr.bf16.mxu1 %v3232_v6  ;;  %2749 = vmatmul.mubr.msk.f32.gmra.mrb[2].mxu0 %vm415_vm3, %v3456_v63 }
  0xb7   : > { %2782 = vmatpush3.msk.msra.mxu0 %vm425_vm2, %v865_v2  ;;  %2751 = vmatprep.mubr.msk.f32.mxu0 %vm3233_vm0, %v3234_v7 }
  0xb8   : > { %2727 = vmatmul.mubr.msk.f32.vlgmr.msra.gmra.mrb[6].mxu1 %vm415_vm3, %v3468_v3 }
  0xb9   : > { %2981 = vmatpush3.bf16.msra.mxu1 %v2980_v10  ;;  %2729 = vmatprep.mubr.msk.f32.mxu1 %vm3233_vm0, %v3234_v7 }
  0xba   : > { %2982 = vmatprep.subr.bf16.mxu1 %v3232_v6  ;;  %2752 = vmatmul.mubr.msk.f32.gmra.mrb[4].mxu0 %vm415_vm3, %v2472_v11 }
  0xbb   : > { %2783 = vmatprep.mubr.msk.f32.mxu0 %vm3233_vm0, %v3234_v7 }
  0xbc   : > { %2730 = vmatmul.mubr.msk.f32.gmra.mrb[8].mxu1 %vm415_vm3, %v3490_v9 }
  0xbd   : > { %2984 = vmatpush3.bf16.msra.mxu1 %v2983_v14  ;;  %2732 = vmatprep.mubr.msk.f32.mxu1 %vm3233_vm0, %v3234_v7 }
  0xbe   : > { %2762 = vmatprep.subr.mxu1 %v3234_v7  ;;  %2784 = vmatmul.mubr.msk.f32.vlgmr.msra.gmra.mrb[6].mxu0 %vm415_vm3, %v2488_v15 }
  0xbf   : > { %2786 = vmatprep.mubr.msk.f32.mxu0 %vm3233_vm0, %v3234_v7 }
  0xc0   : > { %2733 = vmatmul.mubr.msk.f32.gmra.mrb[10].mxu1 %vm415_vm3, %v2455_v16 }
  0xc1   : > { %2763 = vmatpush3.msk.msra.mxu1 %vm425_vm2, %v745_v18  ;;  %2764 = vmatprep.mubr.msk.f32.mxu1 %vm3233_vm0, %v3234_v7 }
  0xc2   : > { %3101 = vmatprep.subr.bf16.mxu1 %v3232_v6  ;;  %2787 = vmatmul.mubr.msk.f32.gmra.mrb[8].mxu0 %vm415_vm3, %v2489_v19 }
  0xc4   : > { %2765 = vmatmul.mubr.msk.f32.vlgmr.msra.gmra.mrb[12].mxu1 %vm415_vm3, %v2479_v20 }
  0xc5   : > { %3104 = vmatpush3.bf16.msra.mxu1 %v3417_v52  ;;  %2767 = vmatprep.mubr.msk.f32.mxu1 %vm3233_vm0, %v3234_v7 }
  0xc6   : > { %3102 = vmatprep.subr.bf16.mxu1 %v3232_v6 }
  0xc8   : > { %2768 = vmatmul.mubr.msk.f32.gmra.mrb[14].mxu1 %vm415_vm3, %v2480_v23 }
  0xc9   : > { %3105 = vmatpush3.bf16.msra.mxu1 %v3439_v57  ;;  %2770 = vmatprep.mubr.msk.f32.mxu1 %vm3233_vm0, %v3234_v7 }
  0xca   : > { %3103 = vmatprep.subr.mxu1 %v3234_v7 }
  0xcc   : > { %2771 = vmatmul.mubr.msk.f32.gmra.mrb[16].mxu1 %vm415_vm3, %v2481_v25  ;;  %v1058_v25 = vld [vmem:[%s3855_s3] sm:$0xff] }
  0xcd   : > { %3106 = vmatpush3.msk.msra.mxu1 %vm425_vm2, %v865_v2  ;;  %2789 = vmatprep.mubr.msk.f32.mxu1 %vm3233_vm0, %v3234_v7  ;;  %vm979_vm2 = vcmask 1040384  }
  0xd0   : > { %2790 = vmatmul.mubr.msk.f32.vlgmr.msra.gmra.mrb[18].mxu1 %vm415_vm3, %v2490_v26  ;;  %vm3235_vm3 = vmmov 1   ;;  %v1059_v26 = vld [vmem:[%s3855_s3 + $0x8] sm:$0xff] }
  0xd1   : > { %2798 = vmatprep.mubr.msk.f32.mxu1 %vm974_vm5, %v3468_v3  ;;  %vm3580_vm6 = vmpackc.low %vm979_vm2, %vm3235_vm3 }
 0x17f   : > { %v495_v27 = vpop.f32.mrb[0].mxu1 }
 0x180   : > { %v2709_v28 = vpop.f32.mrb[1].mxu1 }
 0x181   : > { %v704_v29 = vpop.f32.mrb[0].mxu0 }
 0x182   : > { %v2747_v30 = vpop.f32.mrb[1].mxu0 }
 0x183   : > { %v500_v22 = vpop.f32.mrb[2].mxu1  ;;  %v1060_v30 = vld [vmem:[%s3855_s3 + $0x10] sm:$0xff] }
 0x184   : > { %v2712_v31 = vpop.f32.mrb[3].mxu1 }
 0x187   : > { %v505_v32 = vpop.f32.mrb[4].mxu1 }
 0x188   : > { %v2715_v33 = vpop.f32.mrb[5].mxu1 }
 0x189   : > { %v709_v34 = vpop.f32.mrb[2].mxu0 }
 0x18a   : > { %v2750_v35 = vpop.f32.mrb[3].mxu0 }
 0x18b   : > { %v587_v36 = vpop.f32.mrb[6].mxu1  ;;  %v2518_v35 = vld [vmem:[%s3855_s3 + $0x48] sm:$0xff] }
 0x18c   : > { %v588_v37 = vadd.f32 %v587_v36, %v495_v27  ;;  %v2728_v39 = vpop.f32.mrb[7].mxu1  ;;  %v3009_v27 = vpack.c.bf16 %v1059_v26, %v1058_v25  ;;  %v2545_v26 = vld [vmem:[%s3858_s6] ss:$0 sm:$0xff] }
 0x18d   : > { %v714_v40 = vpop.f32.mrb[4].mxu0  ;;  %v2519_v39 = vld [vmem:[%s3855_s3 + $0x50] sm:$0xff] }
 0x18e   : > { %v718_v41 = vadd.f32 %v704_v29, %v588_v37  ;;  %v2753_v42 = vpop.f32.mrb[5].mxu0 }
 0x18f   : > { %v592_v43 = vpop.f32.mrb[8].mxu1 }
 0x190   : > { %v593_v44 = vadd.f32 %v592_v43, %v500_v22  ;;  %v2731_v45 = vpop.f32.mrb[9].mxu1  ;;  %v1061_v22 = vld [vmem:[%s3855_s3 + $0x18] sm:$0x1]  ;;  %v1572_v43 = vld [vmem:[%s3857_s5] sm:$0xff] }
 0x191   : > { %v944_v46 = vpop.f32.mrb[6].mxu0  ;;  %v3013_v33 = vpack.c.bf16 %v1061_v22, %v1060_v30  ;;  %v2549_v30 = vld [vmem:[%s3859_s7 + $0x28] sm:$0xff] }
 0x192   : > { %v719_v47 = vadd.f32 %v709_v34, %v593_v44  ;;  %v2785_v49 = vpop.f32.mrb[7].mxu0  ;;  %v2517_v34 = vld [vmem:[%s3855_s3 + $0x40] sm:$0xff]  ;;  %v1573_v44 = vld [vmem:[%s3857_s5 + $0x8] sm:$0xff] }
 0x193   : > { %v597_v50 = vpop.f32.mrb[10].mxu1  ;;  %v3023_v36 = vpack.c.bf16 %v2518_v35, %v2517_v34  ;;  %v3049_v45 = vpack.c.bf16 %v1573_v44, %v1572_v43  ;;  %v2551_v34 = vld [vmem:[%s3859_s7 + $0x38] sm:$0x1]  ;;  %v2560_v44 = vld [vmem:[%s3859_s7 + $0x60] sm:$0xff] }
 0x194   : > { %v598_v51 = vadd.f32 %v597_v50, %v505_v32  ;;  %v2734_v52 = vpop.f32.mrb[11].mxu1  ;;  %v2524_v50 = vld [vmem:[%s3856_s4] ss:$0 sm:$0xff] }
 0x195   : > { %v949_v54 = vpop.f32.mrb[8].mxu0 }
 0x196   : > { %v720_v55 = vadd.f32 %v714_v40, %v598_v51  ;;  %v2788_v56 = vpop.f32.mrb[9].mxu0  ;;  %v2520_v40 = vld [vmem:[%s3855_s3 + $0x58] sm:$0x1] }
 0x197   : > { %v824_v57 = vpop.f32.mrb[12].mxu1  ;;  %v3027_v42 = vpack.c.bf16 %v2520_v40, %v2519_v39 }
 0x198   : > { %v838_v58 = vadd.f32 %v824_v57, %v718_v41  ;;  %v2766_v59 = vpop.f32.mrb[13].mxu1 }
 0x199   : > { %v2529_v59 = vld [vmem:[%s3857_s5 + $0x20] sm:$0xff] }
 0x19a   : > { %v958_v60 = vadd.f32 %v944_v46, %v838_v58  ;;  %v1574_v46 = vld [vmem:[%s3857_s5 + $0x10] sm:$0xff] }
 0x19b   : > { %v829_v62 = vpop.f32.mrb[14].mxu1 }
 0x19c   : > { %v839_v0 = vadd.f32 %v829_v62, %v719_v47  ;;  %v2769_v1 = vpop.f32.mrb[15].mxu1  ;;  %v968_v2 = vadd.f32 %v2497_v61, %v958_v60  ;;  %v1575_v47 = vld [vmem:[%s3857_s5 + $0x18] sm:$0x1]  ;;  %v2530_v60 = vld [vmem:[%s3857_s5 + $0x28] sm:$0xff] }
 0x19d   : > { %v3052_v49 = vpack.c.bf16 %v1575_v47, %v1574_v46  ;;  %v2532_v62 = vld [vmem:[%s3857_s5 + $0x38] sm:$0x1] }
 0x19e   : > { %v959_v4 = vadd.f32 %v949_v54, %v839_v0  ;;  %v971_v12 = vmax.f32 %v968_v2, 0.0 }
 0x19f   : > { %v834_v5 = vpop.f32.mrb[16].mxu1 }
 0x1a0   : > { %v969_v8 = vadd.f32 %v2497_v61, %v959_v4  ;;  %v840_v10 = vadd.f32 %v834_v5, %v720_v55  ;;  %v2772_v11 = vpop.f32.mrb[17].mxu1  ;;  %v2539_v5 = vld [vmem:[%s3857_s5 + $0x40] sm:$0xff] }
 0x1a1   : > { %v2541_v11 = vld [vmem:[%s3857_s5 + $0x50] sm:$0xff] }
 0x1a2   : > { %v972_v13 = vmax.f32 %v969_v8, 0.0  ;;  %v2540_v8 = vld [vmem:[%s3857_s5 + $0x48] sm:$0xff] }
 0x1a3   : > { %v954_v14 = vpop.f32.mrb[18].mxu1 }
 0x1a4   : > { %v2991_v15 = vpack.c.bf16 %v972_v13, %v971_v12  ;;  %v960_v16 = vadd.f32 %v954_v14, %v840_v10  ;;  %v2791_v17 = vpop.f32.mrb[19].mxu1  ;;  %v3060_v10 = vpack.c.bf16 %v2540_v8, %v2539_v5 }
 0x1a6   : > { %v970_v18 = vadd.f32 %v2497_v61, %v960_v16  ;;  %2992 = vmatprep.subr.bf16.mxu1 %v2991_v15  ;;  %v3042_v61 = vpack.c.bf16 %v2530_v60, %v2529_v59 }
 0x1a7   : > { %2994 = vmatpush3.bf16.msra.mxu1 %v2991_v15 }
 0x1a8   : > { %v973_v19 = vmax.f32 %v970_v18, 0.0 }
 0x1aa   : > { %2796 = vmatprep.subr.msk.mxu1 %vm979_vm2, %v973_v19 }
 0x1ab   : > { %2797 = vmatpush3.msk.msra.mxu1 %vm979_vm2, %v973_v19 }
 0x1ac   : > { %2799 = vmatmul.mubr.msk.f32.vlgmr.msra.gmra.mrb[20].mxu1 %vm974_vm5, %v3490_v9  ;;  %2996 = vmatprep.subr.bf16.mxu1 %v2991_v15  ;;  %v2505_v9 = vld [vmem:[%s3855_s3 + $0x28] sm:$0xff] }
 0x1ad   : > { %2998 = vmatpush3.bf16.msra.mxu1 %v2991_v15  ;;  %2807 = vmatprep.mubr.msk.f32.mxu1 %vm974_vm5, %v3391_v38 }
 0x1ae   : > { %2805 = vmatprep.subr.msk.mxu1 %vm979_vm2, %v973_v19 }
 0x1b1   : > { %2806 = vmatpush3.msk.msra.mxu1 %vm979_vm2, %v973_v19 }
 0x1b2   : > { %2808 = vmatmul.mubr.msk.f32.vlgmr.msra.gmra.mrb[22].mxu1 %vm974_vm5, %v3423_v53  ;;  %3020 = vmatprep.subr.bf16.mxu1 %v2991_v15  ;;  %v2504_v53 = vld [vmem:[%s3855_s3 + $0x20] sm:$0xff] }
 0x1b3   : > { %3022 = vmatpush3.bf16.msra.mxu1 %v2991_v15  ;;  %2838 = vmatprep.mubr.msk.f32.mxu1 %vm974_vm5, %v3408_v48  ;;  %v2999_v20 = vpack.c.bf16 %v2505_v9, %v2504_v53  ;;  %v1969_v53 = vld [vmem:[%s3859_s7] sm:$0xff]  ;;  %v1970_v9 = vld [vmem:[%s3859_s7 + $0x8] sm:$0xff] }
 0x1b4   : > { %2836 = vmatprep.subr.msk.mxu1 %vm979_vm2, %v973_v19 }
 0x1b5   : > { %3000 = vmatprep.subr.bf16.mxu0 %v2999_v20 }
 0x1b6   : > { %3002 = vmatpush3.bf16.msra.mxu0 %v2999_v20  ;;  %v3067_v20 = vpack.c.bf16 %v1970_v9, %v1969_v53 }
 0x1b7   : > { %2837 = vmatpush3.msk.msra.mxu1 %vm979_vm2, %v973_v19 }
 0x1b8   : > { %2839 = vmatmul.mubr.msk.f32.vlgmr.msra.gmra.mrb[24].mxu1 %vm974_vm5, %v3456_v63  ;;  %3033 = vmatprep.subr.bf16.mxu1 %v3232_v6  ;;  %v2507_v63 = vld [vmem:[%s3855_s3 + $0x38] sm:$0x1] }
 0x1b9   : > { %2856 = vmatprep.mubr.msk.f32.mxu1 %vm3233_vm0, %v3234_v7  ;;  %v3003_v24 = vpack.c.bf16 %v2507_v63, %v2506_v21  ;;  %v1971_v21 = vld [vmem:[%s3859_s7 + $0x10] sm:$0xff]  ;;  %v1972_v63 = vld [vmem:[%s3859_s7 + $0x18] sm:$0x1] }
 0x1bb   : > { %3005 = vmatprep.subr.msk.bf16.mxu0 %vm3580_vm6, %v3003_v24 }
 0x1bc   : > { %3008 = vmatpush3.bf16.msk.msra.mxu0 %vm3580_vm6, %v3003_v24  ;;  %v3070_v24 = vpack.c.bf16 %v1972_v63, %v1971_v21 }
 0x1bd   : > { %3010 = vmatprep.subr.bf16.mxu0 %v3009_v27 }
 0x27f   : > { %v2800_v28 = vpop.f32.mrb[20].mxu1 }
 0x280   : > { %v1049_v29 = vpop.f32.mrb[21].mxu1 }
 0x285   : > { %v2809_v31 = vpop.f32.mrb[22].mxu1 }
 0x286   : > { %v1132_v32 = vpop.f32.mrb[23].mxu1 }
 0x287   : > { %2818 = vmatprep.mubr.msk.f32.mxu0 %vm1146_vm7, %v1132_v32 }
 0x288   : > { %2819 = vmatmul.mubr.msk.f32.vlgmr.msra.gmra.mrb[10].mxu0 %vm1146_vm7, %v2809_v31 }
 0x289   : > { %3012 = vmatpush3.bf16.msra.mxu0 %v3009_v27  ;;  %2829 = vmatprep.mubr.msk.f32.mxu0 %vm1146_vm7, %v1049_v29  ;;  %v2548_v29 = vld [vmem:[%s3859_s7 + $0x20] sm:$0xff] }
 0x28a   : > { %3015 = vmatprep.subr.msk.bf16.mxu0 %vm3580_vm6, %v3013_v33  ;;  %v3074_v31 = vpack.c.bf16 %v2549_v30, %v2548_v29 }
 0x28b   : > { %v2840_v37 = vpop.f32.mrb[24].mxu1 }
 0x28c   : > { %v1385_v41 = vpop.f32.mrb[25].mxu1 }
 0x28d   : > { %3018 = vmatpush3.bf16.msk.msra.mxu0 %vm3580_vm6, %v3013_v33  ;;  %v2550_v33 = vld [vmem:[%s3859_s7 + $0x30] sm:$0xff] }
 0x28e   : > { %3024 = vmatprep.subr.bf16.mxu0 %v3023_v36  ;;  %v3077_v35 = vpack.c.bf16 %v2551_v34, %v2550_v33 }
 0x290   : > { %2830 = vmatmul.mubr.msk.f32.vlgmr.msra.gmra.mrb[10].mxu0 %vm1146_vm7, %v2800_v28 }
 0x291   : > { %3026 = vmatpush3.bf16.msra.mxu0 %v3023_v36  ;;  %2849 = vmatprep.mubr.msk.f32.mxu0 %vm1146_vm7, %v1385_v41  ;;  %v2554_v36 = vld [vmem:[%s3859_s7 + $0x40] sm:$0xff]  ;;  %v2556_v41 = vld [vmem:[%s3859_s7 + $0x50] sm:$0xff] }
 0x292   : > { %3029 = vmatprep.subr.msk.bf16.mxu0 %vm3580_vm6, %v3027_v42 }
 0x295   : > { %3032 = vmatpush3.bf16.msk.msra.mxu0 %vm3580_vm6, %v3027_v42  ;;  %v2557_v42 = vld [vmem:[%s3859_s7 + $0x58] sm:$0x1] }
 0x296   : > { %3048 = vmatprep.subr.bf16.mxu0 %v3232_v6  ;;  %v3084_v43 = vpack.c.bf16 %v2557_v42, %v2556_v41 }
 0x298   : > { %2850 = vmatmul.mubr.msk.f32.vlgmr.msra.gmra.mrb[10].mxu0 %vm1146_vm7, %v2840_v37  ;;  %v2555_v37 = vld [vmem:[%s3859_s7 + $0x48] sm:$0xff] }
 0x299   : > { %2885 = vmatprep.mubr.msk.f32.mxu0 %vm3233_vm0, %v3234_v7  ;;  %3050 = vmatpush3.bf16.msra.mxu0 %v3049_v45  ;;  %v3081_v39 = vpack.c.bf16 %v2555_v37, %v2554_v36  ;;  %v2561_v45 = vld [vmem:[%s3859_s7 + $0x68] sm:$0xff] }
 0x29a   : > { %3051 = vmatprep.subr.bf16.mxu0 %v3232_v6  ;;  %v3088_v46 = vpack.c.bf16 %v2561_v45, %v2560_v44 }
 0x29d   : > { %3054 = vmatpush3.bf16.msk.msra.mxu0 %vm3580_vm6, %v3052_v49  ;;  %v2562_v49 = vld [vmem:[%s3859_s7 + $0x70] sm:$0xff] }
 0x29e   : > { %3066 = vmatprep.subr.bf16.mxu0 %v3232_v6 }
 0x36b   : > { %v2851_v51 = vpop.f32.mrb[10].mxu0 }
 0x36c   : > { %v1493_v52 = vadd.f32 %v2851_v51, %v2524_v50  ;;  %v1474_v54 = vpop.f32.mrb[11].mxu0 }
 0x36d   : > { %v1492_v55 = vadd.f32 %v2524_v50, %v1474_v54  ;;  %v2563_v50 = vld [vmem:[%s3859_s7 + $0x78] sm:$0x1]  ;;  %v2567_v54 = vld [vmem:[%s3859_s7 + $0x88] sm:$0xff] }
 0x36e   : > { %v1495_v56 = vmax.f32 %v1493_v52, 0.0  ;;  %v3091_v51 = vpack.c.bf16 %v2563_v50, %v2562_v49  ;;  %v2566_v52 = vld [vmem:[%s3859_s7 + $0x80] sm:$0xff] }
 0x36f   : > { %v1494_v57 = vmax.f32 %v1492_v55, 0.0  ;;  %v3095_v55 = vpack.c.bf16 %v2567_v54, %v2566_v52 }
 0x371   : > { %v3034_v58 = vpack.c.bf16 %v1495_v56, %v1494_v57  ;;  %v2568_v57 = vld [vmem:[%s3859_s7 + $0x90] sm:$0xff] }
 0x373   : > { %3036 = vmatpush3.bf16.msk.msra.mxu1 %vm3580_vm6, %v3034_v58 }
 0x374   : > { %3037 = vmatprep.subr.bf16.mxu1 %v3232_v6 }
 0x376   : > { %2857 = vmatmul.mubr.msk.f32.vlgmr.msra.gmra.mrb[26].mxu1 %vm1496_vm8, %v3468_v3  ;;  %v2531_v3 = vld [vmem:[%s3857_s5 + $0x30] sm:$0xff] }
 0x377   : > { %3040 = vmatpush3.bf16.msk.msra.mxu1 %vm3580_vm6, %v3034_v58  ;;  %2863 = vmatprep.mubr.msk.f32.mxu1 %vm3233_vm0, %v3234_v7  ;;  %v3045_v0 = vpack.c.bf16 %v2532_v62, %v2531_v3 }
 0x378   : > { %3041 = vmatprep.subr.bf16.mxu1 %v3232_v6 }
 0x37a   : > { %2864 = vmatmul.mubr.msk.f32.vlgmr.msra.gmra.mrb[28].mxu1 %vm1496_vm8, %v3391_v38 }
 0x37b   : > { %3043 = vmatpush3.bf16.msra.mxu1 %v3042_v61  ;;  %2874 = vmatprep.mubr.msk.f32.mxu1 %vm3233_vm0, %v3234_v7  ;;  %v1968_v61 = vld [vmem:[%s3860_s8] sm:$0x1] }
 0x37c   : > { %3044 = vmatprep.subr.bf16.mxu1 %v3232_v6 }
 0x37f   : > { %3047 = vmatpush3.bf16.msk.msra.mxu1 %vm3580_vm6, %v3045_v0 }
 0x380   : > { %3055 = vmatprep.subr.bf16.mxu1 %v3232_v6 }
 0x449   : > { %v1568_v38 = vpop.f32.mrb[26].mxu1 }
 0x44a   : > { %v2858_v1 = vpop.f32.mrb[27].mxu1  ;;  %2886 = vmatmul.mubr.msk.f32.vlgmr.msra.gmra.mrb[12].mxu0 %vm1146_vm7, %v1568_v38 }
 0x44b   : > { %2914 = vmatprep.mubr.msk.f32.mxu0 %vm3233_vm0, %v3234_v7  ;;  %3068 = vmatpush3.bf16.msra.mxu0 %v3067_v20 }
 0x44c   : > { %3069 = vmatprep.subr.bf16.mxu0 %v3232_v6 }
 0x44d   : > { %v1644_v2 = vpop.f32.mrb[28].mxu1 }
 0x44e   : > { %v2865_v4 = vpop.f32.mrb[29].mxu1  ;;  %2875 = vmatmul.mubr.msk.f32.vlgmr.msra.gmra.mrb[30].mxu1 %vm1146_vm7, %v1644_v2 }
 0x44f   : > { %3058 = vmatpush3.bf16.msk.msra.mxu1 %vm3580_vm6, %v3034_v58  ;;  %2892 = vmatprep.mubr.msk.f32.mxu1 %vm3233_vm0, %v3234_v7  ;;  %v2569_v58 = vld [vmem:[%s3859_s7 + $0x98] sm:$0x1] }
 0x450   : > { %3059 = vmatprep.subr.bf16.mxu1 %v3232_v6  ;;  %3072 = vmatpush3.bf16.msk.msra.mxu0 %vm3580_vm6, %v3070_v24  ;;  %v3098_v59 = vpack.c.bf16 %v2569_v58, %v2568_v57 }
 0x451   : > { %3073 = vmatprep.subr.bf16.mxu0 %v3232_v6 }
 0x452   : > { %2893 = vmatmul.mubr.msk.f32.vlgmr.msra.gmra.mrb[32].mxu1 %vm1496_vm8, %v3408_v48  ;;  %v2542_v48 = vld [vmem:[%s3857_s5 + $0x58] sm:$0x1] }
 0x453   : > { %2903 = vmatprep.mubr.msk.f32.mxu1 %vm3233_vm0, %v3234_v7  ;;  %3061 = vmatpush3.bf16.msra.mxu1 %v3060_v10  ;;  %v3063_v12 = vpack.c.bf16 %v2542_v48, %v2541_v11 }
 0x454   : > { %3062 = vmatprep.subr.bf16.mxu1 %v3232_v6 }
 0x457   : > { %3065 = vmatpush3.bf16.msk.msra.mxu1 %vm3580_vm6, %v3063_v12 }
 0x51d   : > { %v1801_v13 = vpop.f32.mrb[12].mxu0 }
 0x51e   : > { %v2887_v14 = vpop.f32.mrb[13].mxu0 }
 0x521   : > { %v1725_v15 = vpop.f32.mrb[30].mxu1 }
 0x522   : > { %v1802_v16 = vadd.f32 %v1801_v13, %v1725_v15  ;;  %v2876_v17 = vpop.f32.mrb[31].mxu1 }
 0x525   : > { %v1873_v18 = vpop.f32.mrb[32].mxu1 }
 0x526   : > { %v2894_v19 = vpop.f32.mrb[33].mxu1  ;;  %2904 = vmatmul.mubr.msk.f32.vlgmr.msra.gmra.mrb[34].mxu1 %vm1146_vm7, %v1873_v18 }
 0x5f9   : > { %v1954_v25 = vpop.f32.mrb[34].mxu1 }
 0x5fa   : > { %v1958_v27 = vadd.f32 %v1954_v25, %v1802_v16  ;;  %v2905_v28 = vpop.f32.mrb[35].mxu1 }
 0x5fc   : > { %v1966_v22 = vadd.f32 %v2545_v26, %v1958_v27 }
 0x5fe   : > { %v1967_v32 = vmax.f32 %v1966_v22, 0.0 }
 0x600   : > { %2915 = vmatmul.mubr.msk.f32.vlgmr.msra.gmra.mrb[14].mxu0 %vm1146_vm7, %v1967_v32  ;;  %v2055_v40 = vrot.slane %v1967_v32, 1  ;;  %v2137_v47 = vrot.slane %v1967_v32, 2  ;;  %v2219_v56 = vrot.slane %v1967_v32, 3  ;;  %v2301_v60 = vrot.slane %v1967_v32, 4 }
 0x601   : > { %3075 = vmatpush3.bf16.msra.mxu0 %v3074_v31  ;;  %2925 = vmatprep.mubr.msk.f32.mxu0 %vm3233_vm0, %v3234_v7 }
 0x602   : > { %3076 = vmatprep.subr.bf16.mxu0 %v3232_v6 }
 0x605   : > { %3079 = vmatpush3.bf16.msk.msra.mxu0 %vm3580_vm6, %v3077_v35 }
 0x606   : > { %3080 = vmatprep.subr.bf16.mxu0 %v3232_v6 }
 0x608   : > { %2926 = vmatmul.mubr.msk.f32.vlgmr.msra.gmra.mrb[14].mxu0 %vm1146_vm7, %v2055_v40 }
 0x609   : > { %3082 = vmatpush3.bf16.msra.mxu0 %v3081_v39  ;;  %2936 = vmatprep.mubr.msk.f32.mxu0 %vm3233_vm0, %v3234_v7 }
 0x60a   : > { %3083 = vmatprep.subr.bf16.mxu0 %v3232_v6 }
 0x60d   : > { %3086 = vmatpush3.bf16.msk.msra.mxu0 %vm3580_vm6, %v3084_v43 }
 0x60e   : > { %3087 = vmatprep.subr.bf16.mxu0 %v3232_v6 }
 0x610   : > { %2937 = vmatmul.mubr.msk.f32.vlgmr.msra.gmra.mrb[14].mxu0 %vm1146_vm7, %v2137_v47 }
 0x611   : > { %3089 = vmatpush3.bf16.msra.mxu0 %v3088_v46  ;;  %2947 = vmatprep.mubr.msk.f32.mxu0 %vm3233_vm0, %v3234_v7 }
 0x612   : > { %3090 = vmatprep.subr.bf16.mxu0 %v3232_v6 }
 0x615   : > { %3093 = vmatpush3.bf16.msk.msra.mxu0 %vm3580_vm6, %v3091_v51 }
 0x616   : > { %3094 = vmatprep.subr.bf16.mxu0 %v3232_v6 }
 0x618   : > { %2948 = vmatmul.mubr.msk.f32.vlgmr.msra.gmra.mrb[14].mxu0 %vm1146_vm7, %v2219_v56 }
 0x619   : > { %3096 = vmatpush3.bf16.msra.mxu0 %v3095_v55  ;;  %2958 = vmatprep.mubr.msk.f32.mxu0 %vm3233_vm0, %v3234_v7 }
 0x61a   : > { %3097 = vmatprep.subr.bf16.mxu0 %v3232_v6 }
 0x61d   : > { %3100 = vmatpush3.bf16.msk.msra.mxu0 %vm3580_vm6, %v3098_v59 }
 0x620   : > { %2959 = vmatmul.mubr.msk.f32.vlgmr.msra.gmra.mrb[14].mxu0 %vm1146_vm7, %v2301_v60 }
 0x6f3   : > { %v2373_v3 = vpop.f32.mrb[14].mxu0 }
 0x6f4   : > { %v3107_v7 = vadd.f32 %v2373_v3, %v1968_v61  ;;  %v2960_v62 = vpop.f32.mrb[15].mxu0 }
 0x6f6   : > { %2379 = vst.msk [vmem:[%s324_s26] sm:$0x1] %vm2378_vm9, %v3107_v7 }
 0x6f7   : > { %3180 = shalt.err (!%p3177_p3)
}
 0x6f8   : > { %s3181_s22 = scalar_lea.hbm %s3810_s14, 16  ;;  %s3185_s26 = scalar_lea.hbm %s3861_s9, 32 }
 0x6f9   : > { %p3182_p4 = scmp.ne.s32.totalorder %s3810_s14, %s3181_s22  ;;  %p3186_p9 = scmp.lt.u32.totalorder %s3810_s14, %s3861_s9 }
 0x6fa   : > { %p3187_p10 = scmp.lt.u32.totalorder %s3185_s26, %s3181_s22  ;;  %p3189_p12 = scmp.lt.u32.totalorder %s3181_s22, %s3810_s14 }
 0x6fb   : > { %p3183_p7 = pnand %p3182_p4, %p3325_p5 }
 0x6fc   : > { %p3188_p11 = por %p3187_p10, %p3186_p9 }
 0x6fd   : > { %p3184_p8 = pneg %p3183_p7 }
 0x6fe   : > { %p3190_p13 = por %p3189_p12, %p3188_p11 }
 0x700   : > { %p3191_p0 = pnand %p3190_p13, %p3184_p8 }
 0x702   : > { %3194 = shalt.err (!%p3191_p0)
}
 0x703   : > { %3121 = dma.vmem_to_hbm [thread:$0]  (%p3325_p5), %s3812_s27, 16, %s3810_s14, %s2381_s16  }
 0x704 PF: > { %p3127_p1 = scmp.ge.s32.totalorder %s3229_s12, 2  ;;  %s2405_s17 = sand.u32 1, %s3217_s30  }
 0x705   : > { %s2406_s13 = scalar_lea.sflag [#allocation3], %s2405_s17 }
 0x706   : > { %p3124_p2 = pnand %p3127_p1, %p3329_p6 }
 0x708   : > { %3212 = dma.done.wait (!%p3124_p2), %s2406_s13, 16  }
 0x709   : > { %3214 = vsyncadd (!%p3124_p2), %s2406_s13, 4294967280  ;;  %p19_p3 = scmp.ge.s32.totalorder %s3312_s15, 4   ;;  %s3866_s30 = smov %s3221_s10 }
 0x70a   : > { %s3867_s10 = smov %s3225_s11  ;;  %s3868_s11 = smov %s3323_s18 }
 0x70b   : > { %s3869_s12 = smov %s3312_s15  ;;  %21 = sbr.rel (!%p19_p3) target bundleno = 3 (0x3), region = 103 }
 0x712   :  { %2410 = vsyncpa [#allocation3], 1 }
 0x713   :  { %2412 = vsyncpa [#allocation3 + $0x1], 1 }

</bundles_post_ra>
